<compile_context>
chip_gen: v6e
topology: v6e:2x2x1
jax: 0.10.0
libtpu: 0.0.40
codegen_flags: <defaults>
</compile_context>

<pallas_src>
import jax
import jax.numpy as jnp
from jax.experimental import pallas as pl
from jax.experimental.pallas import tpu as pltpu

# ---- small, shape-consistent config (BERT-base-chinese would be H=768, V=21128) ----
BATCH = 2
SEQ = 16          # must be >= 16 so that position index 15 exists
HIDDEN = 64
HEADS = 4
FFN = 128
VOCAB = 512
CLS_POS = 15

SUBLANE = 8
B_PAD = ((BATCH + SUBLANE - 1) // SUBLANE) * SUBLANE     # pad rows to sublane multiple


def _round_up(x, m):
    return ((x + m - 1) // m) * m


def _vocab_tiling(vocab):
    """Pick a large lane-dense vocab tile and the padded vocab size.

    Toy config: TV == padded vocab (single grid step).  At real scale
    (H=768, V=21128) this gives TV=2048, V_pad=22528 -> 11 'parallel' grid
    steps (sharded across both TensorCores on v7x) and a double-buffered bf16
    weight tile of 2 x 3 MiB, well inside v7x's 32 MiB scoped-VMEM budget.
    """
    v128 = _round_up(vocab, 128)
    tv = 2048 if v128 >= 2048 else v128
    v_pad = _round_up(vocab, tv)
    return tv, v_pad


TV, V_PAD = _vocab_tiling(VOCAB)


# ----------------------------- Pallas decoder kernel -----------------------------
def decoder_kernel(x_ref, w_ref, b_ref, o_ref):
    # x: (B_PAD, H) bf16 full block (resident across the vocab sweep)
    # w: (H, TV)   bf16 vocab tile  (the streamed, bandwidth-dominant operand)
    # b: (1, TV)   f32 bias tile
    # o: (B_PAD, TV) f32 logits tile
    acc = jnp.dot(x_ref[...], w_ref[...], preferred_element_type=jnp.float32)
    o_ref[...] = acc + b_ref[...]


def pallas_decoder(x_pad_bf16, w_bf16, b_pad):
    """y = x @ W + b, tiled over the (padded) vocab axis on the MXU.

    x_pad_bf16: (B_PAD, H) bf16  — rows padded to a sublane multiple
    w_bf16:     (H, V_PAD) bf16  — decoder weight (== nn.Linear.weight.T), vocab-padded
    b_pad:      (1, V_PAD) f32
    """
    Bp, H = x_pad_bf16.shape
    _, Vp = w_bf16.shape
    assert Vp % TV == 0 and Bp % SUBLANE == 0
    grid = (Vp // TV,)
    return pl.pallas_call(
        decoder_kernel,
        out_shape=jax.ShapeDtypeStruct((Bp, Vp), jnp.float32),
        grid_spec=pltpu.PrefetchScalarGridSpec(
            num_scalar_prefetch=0,
            grid=grid,
            in_specs=[
                pl.BlockSpec((Bp, H), lambda j: (0, 0)),     # activation, VMEM-resident
                pl.BlockSpec((H, TV), lambda j: (0, j)),     # streamed weight tile
                pl.BlockSpec((1, TV), lambda j: (0, j)),     # bias tile
            ],
            out_specs=pl.BlockSpec((Bp, TV), lambda j: (0, j)),
        ),
        compiler_params=pltpu.CompilerParams(
            # vocab axis is independent -> megacore-shardable on v7x's 2 TCs
            dimension_semantics=("parallel",),
            # explicit limit: safe on v5e/v6e (128 MiB VMEM) and v7x (64 MiB / 32 MiB scoped)
            vmem_limit_bytes=32 * 1024 * 1024,
        ),
    )(x_pad_bf16, w_bf16, b_pad)


# --------------------- deterministic synthetic frozen "BERT" ---------------------
# TODO(synk): the real pretrained `BertModel.from_pretrained('bert_base_chinese')`
# is an external checkpoint; it is replaced by this small deterministic encoder.
def init_params(key):
    ks = jax.random.split(key, 12)
    s = 0.02
    # Model.__init__: decoder = Linear(768, vocab, bias=False); bias = zeros(vocab)
    dec_w_f32 = s * jax.random.normal(ks[9], (HIDDEN, VOCAB), jnp.float32)  # = weight.T
    # pad vocab to a multiple of the tile so every store stays lane-dense; store bf16
    dec_w_pad = jnp.zeros((HIDDEN, V_PAD), jnp.float32).at[:, :VOCAB].set(dec_w_f32)
    # TODO(synk): on v5e/v6e an int8-quantized dec_w (per-column scales) would cut
    # the dominant HBM traffic a further 2x; v7x's MXU has no int8, so bf16 is kept.
    p = {
        "word_emb": s * jax.random.normal(ks[0], (VOCAB, HIDDEN), jnp.float32),
        "pos_emb": s * jax.random.normal(ks[1], (SEQ, HIDDEN), jnp.float32),
        "type_emb": s * jax.random.normal(ks[2], (2, HIDDEN), jnp.float32),
        "wq": s * jax.random.normal(ks[3], (HIDDEN, HIDDEN), jnp.float32),
        "wk": s * jax.random.normal(ks[4], (HIDDEN, HIDDEN), jnp.float32),
        "wv": s * jax.random.normal(ks[5], (HIDDEN, HIDDEN), jnp.float32),
        "wo": s * jax.random.normal(ks[6], (HIDDEN, HIDDEN), jnp.float32),
        "ffn1": s * jax.random.normal(ks[7], (HIDDEN, FFN), jnp.float32),
        "ffn2": s * jax.random.normal(ks[8], (FFN, HIDDEN), jnp.float32),
        "dec_w": dec_w_pad.astype(jnp.bfloat16),            # (H, V_PAD) bf16
        "dec_b": jnp.zeros((1, V_PAD), jnp.float32),         # (1, V_PAD) f32
    }
    return p


def layernorm(x, eps=1e-12):
    mu = jnp.mean(x, axis=-1, keepdims=True)
    var = jnp.mean((x - mu) ** 2, axis=-1, keepdims=True)
    return (x - mu) * jax.lax.rsqrt(var + eps)


def frozen_bert(p, input_ids, attention_mask, token_type_ids):
    # embeddings
    h = (
        p["word_emb"][input_ids]
        + p["pos_emb"][jnp.arange(SEQ)][None, :, :]
        + p["type_emb"][token_type_ids]
    )
    h = layernorm(h)

    # one self-attention + FFN block (stand-in for the 12 BERT layers)
    hd = HIDDEN // HEADS
    q = (h @ p["wq"]).reshape(BATCH, SEQ, HEADS, hd).transpose(0, 2, 1, 3)
    k = (h @ p["wk"]).reshape(BATCH, SEQ, HEADS, hd).transpose(0, 2, 1, 3)
    v = (h @ p["wv"]).reshape(BATCH, SEQ, HEADS, hd).transpose(0, 2, 1, 3)
    scores = jnp.einsum("bhqd,bhkd->bhqk", q, k) / jnp.sqrt(jnp.float32(hd))
    mask_bias = (1.0 - attention_mask.astype(jnp.float32))[:, None, None, :] * -1e9
    attn = jax.nn.softmax(scores + mask_bias, axis=-1)
    ctx = jnp.einsum("bhqk,bhkd->bhqd", attn, v).transpose(0, 2, 1, 3).reshape(BATCH, SEQ, HIDDEN)
    h = layernorm(h + ctx @ p["wo"])
    h = layernorm(h + jax.nn.gelu(h @ p["ffn1"]) @ p["ffn2"])
    return h  # last_hidden_state: (B, SEQ, HIDDEN)


# --------------------------------- Model.forward ---------------------------------
def model_forward(p, input_ids, attention_mask, token_type_ids):
    # with torch.no_grad(): out = pretrained_model(...)
    last_hidden_state = jax.lax.stop_gradient(
        frozen_bert(p, input_ids, attention_mask, token_type_ids)
    )
    # out = dropout(out.last_hidden_state[:, 15])  -- dropout(p=0.1) is identity in eval
    x = last_hidden_state[:, CLS_POS]                      # (B, HIDDEN)
    # pad rows to a sublane multiple (unmasked stores) and pre-cast to bf16 so the
    # kernel body is a pure MXU dot + bias add (no per-grid-step re-cast of x)
    x_pad = jnp.zeros((B_PAD, HIDDEN), jnp.bfloat16).at[:BATCH].set(x.astype(jnp.bfloat16))
    # out = decoder(out)   -- Pallas MXU kernel: x @ W.T + bias, tiled over vocab
    logits_pad = pallas_decoder(x_pad, p["dec_w"], p["dec_b"])   # (B_PAD, V_PAD) f32
    return logits_pad[:BATCH, :VOCAB]                      # (B, VOCAB)


if __name__ == "__main__":
    key = jax.random.PRNGKey(0)
    k_param, k_ids = jax.random.split(key)
    params = init_params(k_param)

    input_ids = jax.random.randint(k_ids, (BATCH, SEQ), 0, VOCAB, dtype=jnp.int32)
    attention_mask = jnp.ones((BATCH, SEQ), dtype=jnp.int32)
    token_type_ids = jnp.zeros((BATCH, SEQ), dtype=jnp.int32)

    forward = jax.jit(model_forward)
    logits = forward(params, input_ids, attention_mask, token_type_ids)
    jax.block_until_ready(logits)
    assert logits.shape == (BATCH, VOCAB) and logits.dtype == jnp.float32

    # cross-check the Pallas decoder against plain JAX (same bf16 operands, f32 accum)
    x = jax.lax.stop_gradient(
        frozen_bert(params, input_ids, attention_mask, token_type_ids)
    )[:, CLS_POS]
    ref = (
        jnp.dot(
            x.astype(jnp.bfloat16), params["dec_w"], preferred_element_type=jnp.float32
        )
        + params["dec_b"]
    )[:, :VOCAB]
    assert jnp.allclose(logits, ref, atol=1e-4, rtol=1e-4)

    print("KERNEL_OK")
</pallas_src>

<mosaic_0001>
module attributes {stable_mosaic.version = 11 : i64} {
  func.func @decoder_kernel(%arg0: i32, %arg1: memref<8x64xbf16, #tpu.memory_space<vmem>>, %arg2: memref<64x512xbf16, #tpu.memory_space<vmem>>, %arg3: memref<1x512xf32, #tpu.memory_space<vmem>>, %arg4: memref<8x512xf32, #tpu.memory_space<vmem>>) attributes {dimension_semantics = [#tpu.dimension_semantics<parallel>], iteration_bounds = array<i64: 1>, scalar_prefetch = 0 : i64, scratch_operands = 0 : i64, tpu.core_type = #tpu.core_type<tc>, window_params = [{pipeline_mode = #tpu.pipeline_mode<synchronous>, transform_indices = @transform_0, window_bounds = array<i64: 8, 64>}, {transform_indices = @transform_1, window_bounds = array<i64: 64, 512>}, {transform_indices = @transform_2, window_bounds = array<i64: 1, 512>}, {transform_indices = @transform_3, window_bounds = array<i64: 8, 512>}]} {
    %c0 = arith.constant 0 : index
    %c0_0 = arith.constant 0 : index
    %0 = vector.load %arg1[%c0, %c0_0] : memref<8x64xbf16, #tpu.memory_space<vmem>>, vector<8x64xbf16>
    %c0_1 = arith.constant 0 : index
    %c0_2 = arith.constant 0 : index
    %1 = vector.load %arg2[%c0_1, %c0_2] : memref<64x512xbf16, #tpu.memory_space<vmem>>, vector<64x512xbf16>
    %cst = arith.constant dense<0.000000e+00> : vector<8x512xf32>
    %2 = tpu.matmul %0, %1, %cst {dimension_numbers = #tpu.dot_dimension_numbers<[1], [0], [0], [1], [0, 0, 1, 1], [], []>} : vector<8x64xbf16>, vector<64x512xbf16>, vector<8x512xf32> -> vector<8x512xf32>
    %c0_3 = arith.constant 0 : index
    %c0_4 = arith.constant 0 : index
    %3 = vector.load %arg3[%c0_3, %c0_4] : memref<1x512xf32, #tpu.memory_space<vmem>>, vector<1x512xf32>
    %4 = vector.broadcast %3 : vector<1x512xf32> to vector<8x512xf32>
    %5 = arith.addf %2, %4 : vector<8x512xf32>
    %c0_5 = arith.constant 0 : index
    %c0_6 = arith.constant 0 : index
    %6 = vector.load %arg4[%c0_5, %c0_6] : memref<8x512xf32, #tpu.memory_space<vmem>>, vector<8x512xf32>
    tpu.vector_store %arg4[%c0_5, %c0_6], %5 {strides = array<i32>} : memref<8x512xf32, #tpu.memory_space<vmem>>, vector<8x512xf32>,
    return
  }
  func.func @transform_0(%arg0: i32) -> (i32, i32) {
    %c0_i32 = arith.constant 0 : i32
    %c0_i32_0 = arith.constant 0 : i32
    %c0_i32_1 = arith.constant 0 : i32
    return %c0_i32, %c0_i32_0 : i32, i32
  }
  func.func @transform_1(%arg0: i32) -> (i32, i32) {
    %c0_i32 = arith.constant 0 : i32
    %c0_i32_0 = arith.constant 0 : i32
    return %c0_i32, %arg0 : i32, i32
  }
  func.func @transform_2(%arg0: i32) -> (i32, i32) {
    %c0_i32 = arith.constant 0 : i32
    %c0_i32_0 = arith.constant 0 : i32
    return %c0_i32, %arg0 : i32, i32
  }
  func.func @transform_3(%arg0: i32) -> (i32, i32) {
    %c0_i32 = arith.constant 0 : i32
    %c0_i32_0 = arith.constant 0 : i32
    return %c0_i32, %arg0 : i32, i32
  }
}

</mosaic_0001>

<bundles_post_ra>
// kernel: model_forward.1
= control target key start
LH: loop header
LB: loop body
LE: loop exit
PB: predicated region body
PF: predicated region fallthrough
CT: control target
= control target key end

     0   :  { %v271_v1 = vmov 0   ;;  %vm134_vm0 = vcmask 523264   ;;  %v34_v18 = vlaneseq  ;;  %s358_s1 = inlined_call_operand.vmem [shape: bf16[64,512], index: 1, kind: input, shape index: {}]   ;;  %s359_s0 = inlined_call_operand.vmem [shape: bf16[8,64], index: 0, kind: input, shape index: {}]   ;;  %s360_s2 = inlined_call_operand.vmem [shape: f32[1,512], index: 2, kind: input, shape index: {}]   ;;  %s361_s3 = inlined_call_operand.vmem [shape: f32[8,512], index: 3, kind: output, shape index: {}]  }
   0x1   :  { %v247_v0 = vld [vmem:[%s358_s1 + $0x64] ss:$16 sps:$4 sm:$0xff]   ;;  %170 = vmatprep.mubr.bf16.mxu0 %v271_v1  ;;  %211 = vmatprep.mubr.bf16.mxu1 %v271_v1  ;;  %v249_v2 = vld [vmem:[%s358_s1 + $0x6c] ss:$16 sps:$4 sm:$0xff]   ;;  %v251_v3 = vld [vmem:[%s358_s1 + $0x60] ss:$16 sps:$4 sm:$0xff]  }
   0x2   :  { %146 = vmatprep.subr.bf16.mxu0 %v247_v0  ;;  %v252_v4 = vld [vmem:[%s358_s1 + $0x68] ss:$16 sps:$4 sm:$0xff]   ;;  %187 = vmatprep.subr.bf16.mxu1 %v249_v2  ;;  %v253_v5 = vld [vmem:[%s358_s1 + $0x44] ss:$16 sps:$4 sm:$0xff]   ;;  %v255_v6 = vld [vmem:[%s358_s1 + $0x4c] ss:$16 sps:$4 sm:$0xff]  }
   0x3   :  { %147 = vmatpush1.bf16.msra.mxu0 %v251_v3  ;;  %188 = vmatpush1.bf16.msra.mxu1 %v252_v4  ;;  %v257_v7 = vld [vmem:[%s358_s1 + $0x40] ss:$16 sps:$4 sm:$0xff]   ;;  %v258_v8 = vld [vmem:[%s358_s1 + $0x48] ss:$16 sps:$4 sm:$0xff]   ;;  %v259_v9 = vld [vmem:[%s358_s1 + $0x24] ss:$16 sps:$4 sm:$0xff]  }
   0x4   :  { %148 = vmatprep.subr.bf16.mxu0 %v253_v5  ;;  %189 = vmatprep.subr.bf16.mxu1 %v255_v6  ;;  %v261_v10 = vld [vmem:[%s358_s1 + $0x2c] ss:$16 sps:$4 sm:$0xff]   ;;  %v263_v11 = vld [vmem:[%s358_s1 + $0x20] ss:$16 sps:$4 sm:$0xff]   ;;  %v264_v12 = vld [vmem:[%s358_s1 + $0x28] ss:$16 sps:$4 sm:$0xff]  }
   0x5   :  { %v265_v13 = vld [vmem:[%s358_s1 + $0x4] ss:$16 sps:$4 sm:$0xff]   ;;  %v267_v14 = vld [vmem:[%s358_s1 + $0xc] ss:$16 sps:$4 sm:$0xff]   ;;  %v269_v15 = vld [vmem:[%s358_s1] ss:$16 sps:$4 sm:$0xff]  }
   0x6   :  { %v270_v16 = vld [vmem:[%s358_s1 + $0x8] ss:$16 sps:$4 sm:$0xff]   ;;  %v15_v17 = vld [vmem:[%s359_s0] sm:$0xf]  ;;  %v35_v19 = vshrl.u32 %v34_v18, 7 }
   0x7   :  { %149 = vmatpush1.bf16.msra.mxu0 %v257_v7  ;;  %190 = vmatpush1.bf16.msra.mxu1 %v258_v8  ;;  %v32_v22 = vld [vmem:[%s360_s2] sm:$0xf] }
   0x8   :  { %150 = vmatprep.subr.bf16.mxu0 %v259_v9  ;;  %191 = vmatprep.subr.bf16.mxu1 %v261_v10  ;;  %v36_v20 = vsub.s32 0, %v35_v19  ;;  %v44_v21 = vsub.s32 2, %v35_v19  ;;  %v40_v23 = vsub.s32 1, %v35_v19  ;;  %v48_v24 = vsub.s32 3, %v35_v19 }
   0xa   :  { %v37_v25 = vrot.slane %v32_v22, %v36_v20  ;;  %v45_v26 = vrot.slane %v32_v22, %v44_v21  ;;  %v41_v27 = vrot.slane %v32_v22, %v40_v23  ;;  %v49_v28 = vrot.slane %v32_v22, %v48_v24 }
   0xb   :  { %151 = vmatpush1.bf16.msra.mxu0 %v263_v11  ;;  %192 = vmatpush1.bf16.msra.mxu1 %v264_v12 }
   0xc   :  { %152 = vmatprep.subr.bf16.mxu0 %v265_v13  ;;  %193 = vmatprep.subr.bf16.mxu1 %v267_v14 }
   0xf   :  { %153 = vmatpush1.bf16.msra.mxu0 %v269_v15  ;;  %194 = vmatpush1.bf16.msra.mxu1 %v270_v16 }
  0x12   :  { %244 = vmatmul.mubr.msk.bf16.vlgmr.msra.gmra.mxu0 %vm134_vm0, %v15_v17  ;;  %245 = vmatmul.mubr.msk.bf16.vlgmr.msra.gmra.mxu1 %vm134_vm0, %v15_v17 }
  0xd2   :  { %v172_v29 = vpop.f32.mrf.mxu0  ;;  %v213_v30 = vpop.f32.mrf.mxu1 }
  0xd3   :  { %v173_v31 = vadd.f32 %v172_v29, %v37_v25  ;;  %v214_v32 = vadd.f32 %v213_v30, %v45_v26 }
  0xd4   :  { %v174_v33 = vpop.f32.mrf.mxu0  ;;  %v215_v34 = vpop.f32.mrf.mxu1 }
  0xd5   :  { %220 = vst [vmem:[%s361_s3] sm:$0xff] %v173_v31  ;;  %222 = vst [vmem:[%s361_s3 + $0x10] sm:$0xff] %v214_v32  ;;  %v175_v35 = vadd.f32 %v174_v33, %v41_v27  ;;  %v216_v36 = vadd.f32 %v215_v34, %v49_v28 }
  0xd6   :  { %v176_v37 = vpop.f32.mrf.mxu0  ;;  %v217_v38 = vpop.f32.mrf.mxu1 }
  0xd7   :  { %221 = vst [vmem:[%s361_s3 + $0x8] sm:$0xff] %v175_v35  ;;  %223 = vst [vmem:[%s361_s3 + $0x18] sm:$0xff] %v216_v36 }
  0xd8   :  { %v177_v39 = vpop.f32.mrf.mxu0  ;;  %v218_v40 = vpop.f32.mrf.mxu1 }

</bundles_post_ra>
